<compile_context>
chip_gen: v7x
topology: tpu7x:2x2x1
jax: 0.10.0
libtpu: 0.0.40
codegen_flags: <defaults>
</compile_context>

<pallas_src>
import functools

import jax
import jax.numpy as jnp
from jax.experimental import pallas as pl
from jax.experimental.pallas import tpu as pltpu


def _round_up(x, m):
    return (x + m - 1) // m * m


def _corr_stats_kernel(rgb_ref, pred_ref, out_ref, *, total_rows, rows_tile,
                       sub_rows, tiles_per_par):
    """Accumulate masked sufficient statistics for one (parallel-slice, tile).

    out_ref is a resident (5*8, 128) f32 block of lane-preserving partial sums:
      rows  0- 7: count, 8-15: sum(pred), 16-23: sum(BG_R),
      rows 24-31: sum(pred^2), 32-39: sum(BG_R^2).
    """
    p = pl.program_id(0)
    t = pl.program_id(1)

    # Zero the resident partial-sum block at the start of each parallel slice.
    @pl.when(t == 0)
    def _():
        out_ref[...] = jnp.zeros_like(out_ref)

    n = pred_ref.shape[0]
    c = rgb_ref.shape[1]
    n_sub = rows_tile // sub_rows
    groups = (n * sub_rows) // 8

    # Logical (unclamped) first row of this tile.  For overflow grid steps the
    # index_map clamps the DMA onto the last real block, and tile_base >=
    # total_rows makes the row mask below zero out their contribution.
    tile_base = (p * tiles_per_par + t) * rows_tile

    # Hoisted once per grid step: local row index of each sublane row inside a
    # compute sub-chunk (full shape so no bool-broadcast is needed later).
    local_row = jax.lax.broadcasted_iota(jnp.int32, (n, sub_rows, 128), 1)

    def fold(x):
        # (n, sub_rows, 128) -> (8, 128) using only cross-vreg VPU adds.
        # The reshape keeps the 128-lane minor dim and sub_rows is a multiple
        # of 8, so it is layout-preserving (no data movement).
        return jnp.sum(x.reshape(groups, 8, 128), axis=0)

    @pl.loop(0, n_sub)
    def _(s):
        r0 = pl.multiple_of(s * sub_rows, sub_rows)

        pred = pred_ref[:, pl.ds(r0, sub_rows), :].astype(jnp.float32)
        # Rows past the true array extent are DMA'd as undefined bits (could be
        # NaN/Inf); mask by global row index and use jnp.where (not a float
        # multiply) so garbage can never contaminate the sums.
        row_limit = total_rows - tile_base - s * sub_rows
        mask = (pred > 0.0) & (local_row < row_limit)

        # BG_R = max(rgb[:, 1:, ...], axis=1) - rgb[:, 0, ...]
        bg = rgb_ref[:, 1, pl.ds(r0, sub_rows), :].astype(jnp.float32)
        for ch in range(2, c):  # static trace-time loop over channels
            bg = jnp.maximum(
                bg, rgb_ref[:, ch, pl.ds(r0, sub_rows), :].astype(jnp.float32))
        bg_r = bg - rgb_ref[:, 0, pl.ds(r0, sub_rows), :].astype(jnp.float32)

        cnt_t = mask.astype(jnp.float32)
        pm = jnp.where(mask, pred, 0.0)
        bm = jnp.where(mask, bg_r, 0.0)

        out_ref[pl.ds(0, 8), :] += fold(cnt_t)
        out_ref[pl.ds(8, 8), :] += fold(pm)
        out_ref[pl.ds(16, 8), :] += fold(bm)
        out_ref[pl.ds(24, 8), :] += fold(pm * pm)
        out_ref[pl.ds(32, 8), :] += fold(bm * bm)


@functools.partial(
    jax.jit,
    static_argnames=("rows_per_tile", "sub_rows", "n_par", "target_step_bytes"))
def correlation_loss(rgb, target, pred, *, rows_per_tile=None, sub_rows=256,
                     n_par=1, target_step_bytes=8 << 20):
    """Pallas port of CorrelationLoss.forward(rgb, target, pred).

    n_par shards the row axis across TensorCores: keep 1 on v5e/v6e (single
    TC); pass 2 on v7x.
    """
    assert pred.ndim == target.ndim, "inconsistent dimensions"
    n, c, h, w = rgb.shape
    assert pred.shape == (n, 1, h, w)
    assert c >= 2
    hw = h * w

    # Lane/sublane-dense layout: fold HW into (rows, 128) with rows a multiple
    # of 8.  Inputs keep their native dtype in HBM (cast to f32 in-kernel).
    hw_pad = _round_up(hw, 8 * 128)
    rgb_f = rgb.reshape(n, c, hw)
    pred_f = pred.reshape(n, hw)
    if hw_pad != hw:
        # Only hit when H*W is not a multiple of 1024 (one extra HBM copy).
        # Padded pred is 0 -> masked out of every statistic; rgb pad is 0.
        rgb_f = jnp.pad(rgb_f, ((0, 0), (0, 0), (0, hw_pad - hw)))
        pred_f = jnp.pad(pred_f, ((0, 0), (0, hw_pad - hw)))
    rows = hw_pad // 128
    rgb_r = rgb_f.reshape(n, c, rows, 128)
    pred_r = pred_f.reshape(n, rows, 128)

    # --- tile sizing --------------------------------------------------------
    # ~target_step_bytes of HBM traffic per grid step (8 MiB default keeps the
    # ~0.35us fixed step cost below ~15% even on v7x's 3.2 TB/s HBM), while the
    # compute slab (sub_rows) bounds the f32 intermediates to a few hundred KiB.
    bytes_per_row = 128 * n * (c * rgb.dtype.itemsize + pred.dtype.itemsize)
    if rows_per_tile is None:
        rows_per_tile = max(8, (target_step_bytes // bytes_per_row) // 8 * 8)
    rows_tile = min(rows, _round_up(rows_per_tile, 8))
    sub_rows = min(_round_up(sub_rows, 8), rows_tile)
    rows_tile = (rows_tile // sub_rows) * sub_rows  # multiple of sub_rows

    tiles_total = pl.cdiv(rows, rows_tile)
    n_par = max(1, min(n_par, tiles_total))
    tiles_per_par = pl.cdiv(tiles_total, n_par)

    # Overflow steps of the last parallel slice are clamped onto the last real
    # block (valid DMA) and contribute nothing (row-index mask in the kernel).
    def _row_block(p, t):
        return jnp.minimum(p * tiles_per_par + t, tiles_total - 1)

    rgb_spec = pl.BlockSpec((n, c, rows_tile, 128),
                            lambda p, t: (0, 0, _row_block(p, t), 0))
    pred_spec = pl.BlockSpec((n, rows_tile, 128),
                             lambda p, t: (0, _row_block(p, t), 0))
    out_spec = pl.BlockSpec((5 * 8, 128), lambda p, t: (p, 0))

    kernel = functools.partial(
        _corr_stats_kernel, total_rows=rows, rows_tile=rows_tile,
        sub_rows=sub_rows, tiles_per_par=tiles_per_par)

    partials = pl.pallas_call(
        kernel,
        out_shape=jax.ShapeDtypeStruct((n_par * 5 * 8, 128), jnp.float32),
        grid=(n_par, tiles_per_par),
        in_specs=[rgb_spec, pred_spec],
        out_specs=out_spec,
        compiler_params=pltpu.CompilerParams(
            dimension_semantics=("parallel", "arbitrary"),
            vmem_limit_bytes=32 * 1024 * 1024,
        ),
    )(rgb_r, pred_r)

    # Combine lane-wise partial sums and finalize the scalar loss (O(1) work).
    stats = partials.reshape(n_par, 5, 8, 128).sum(axis=(0, 2, 3))
    cnt, s_p, s_b, s_pp, s_bb = stats[0], stats[1], stats[2], stats[3], stats[4]
    mean_p = s_p / cnt
    mean_b = s_b / cnt
    num1 = s_p - cnt * mean_p          # sum(pred[mask] - mean_p)
    num2 = s_b - cnt * mean_b          # sum(BG_R[mask] - mean_b)
    den1 = s_pp - s_p * mean_p         # sum((pred[mask] - mean_p)^2)
    den2 = s_bb - s_b * mean_b         # sum((BG_R[mask] - mean_b)^2)
    return 1.0 - num1 * num2 / jnp.sqrt(den1 * den2)


def correlation_loss_ref(rgb, target, pred):
    """Pure-JAX reference (masked-sum formulation of the torch boolean indexing)."""
    rgb = rgb.astype(jnp.float32)
    pred = pred.astype(jnp.float32)
    bg_r = jnp.max(rgb[:, 1:, :, :], axis=1, keepdims=True) - rgb[:, 0:1, :, :]
    mask = pred > 0
    cnt = jnp.sum(mask.astype(jnp.float32))
    mean_p = jnp.sum(jnp.where(mask, pred, 0.0)) / cnt
    mean_b = jnp.sum(jnp.where(mask, bg_r, 0.0)) / cnt
    num1 = jnp.sum(jnp.where(mask, pred - mean_p, 0.0))
    num2 = jnp.sum(jnp.where(mask, bg_r - mean_b, 0.0))
    den1 = jnp.sum(jnp.where(mask, (pred - mean_p) ** 2, 0.0))
    den2 = jnp.sum(jnp.where(mask, (bg_r - mean_b) ** 2, 0.0))
    return 1.0 - num1 * num2 / jnp.sqrt(den1 * den2)


if __name__ == "__main__":
    key = jax.random.PRNGKey(0)
    keys = jax.random.split(key, 7)

    N, C, H, W = 2, 3, 16, 16
    rgb = jax.random.uniform(keys[0], (N, C, H, W), dtype=jnp.float32)
    target = jax.random.uniform(keys[1], (N, 1, H, W), dtype=jnp.float32)
    # pred ~ normal so roughly half the elements pass the (pred > 0) mask.
    pred = jax.random.normal(keys[2], (N, 1, H, W), dtype=jnp.float32)

    ref = correlation_loss_ref(rgb, target, pred)
    loss = jax.block_until_ready(correlation_loss(rgb, target, pred))
    assert jnp.isfinite(loss), loss
    assert jnp.allclose(loss, ref, atol=1e-4), (loss, ref)

    # Multiple sequential row-tiles and inner accumulation: grid (1, 3).
    H2, W2 = 48, 64  # hw = 3072 -> rows = 24, no padding
    rgb2 = jax.random.uniform(keys[3], (N, C, H2, W2), dtype=jnp.float32)
    tgt2 = jnp.zeros((N, 1, H2, W2), jnp.float32)
    pred2 = jax.random.normal(keys[4], (N, 1, H2, W2), dtype=jnp.float32)
    ref2 = correlation_loss_ref(rgb2, tgt2, pred2)
    loss2 = jax.block_until_ready(
        correlation_loss(rgb2, tgt2, pred2, rows_per_tile=8, sub_rows=8))
    assert jnp.allclose(loss2, ref2, atol=1e-4), (loss2, ref2)

    # Parallel axis + ragged coverage: grid (2, 2); the last grid step is
    # clamped onto the final block and fully masked out.
    loss2p = jax.block_until_ready(
        correlation_loss(rgb2, tgt2, pred2, rows_per_tile=8, sub_rows=8,
                         n_par=2))
    assert jnp.allclose(loss2p, ref2, atol=1e-4), (loss2p, ref2)

    # Spatial size not a multiple of 1024 -> wrapper pad + pred>0 masking.
    H3, W3 = 20, 20
    rgb3 = jax.random.uniform(keys[5], (N, C, H3, W3), dtype=jnp.float32)
    tgt3 = jnp.zeros((N, 1, H3, W3), jnp.float32)
    pred3 = jax.random.normal(keys[6], (N, 1, H3, W3), dtype=jnp.float32)
    ref3 = correlation_loss_ref(rgb3, tgt3, pred3)
    loss3 = jax.block_until_ready(correlation_loss(rgb3, tgt3, pred3))
    assert jnp.allclose(loss3, ref3, atol=1e-4), (loss3, ref3)

    # bf16 inputs stay bf16 on the HBM side; cast to f32 happens in-kernel.
    loss_bf16 = jax.block_until_ready(
        correlation_loss(rgb.astype(jnp.bfloat16), target,
                         pred.astype(jnp.bfloat16)))
    ref_bf16 = correlation_loss_ref(rgb.astype(jnp.bfloat16), target,
                                    pred.astype(jnp.bfloat16))
    assert jnp.isfinite(loss_bf16), loss_bf16
    assert jnp.allclose(loss_bf16, ref_bf16, atol=1e-2), (loss_bf16, ref_bf16)

    print("KERNEL_OK")
</pallas_src>

<mosaic_0001>
module attributes {stable_mosaic.version = 11 : i64} {
  func.func @_corr_stats_kernel(%arg0: i32, %arg1: i32, %arg2: memref<2x3x8x128xf32, #tpu.memory_space<vmem>>, %arg3: memref<2x8x128xf32, #tpu.memory_space<vmem>>, %arg4: memref<40x128xf32, #tpu.memory_space<vmem>>) attributes {dimension_semantics = [#tpu.dimension_semantics<parallel>, #tpu.dimension_semantics<arbitrary>], iteration_bounds = array<i64: 1, 1>, scalar_prefetch = 0 : i64, scratch_operands = 0 : i64, tpu.core_type = #tpu.core_type<tc>, window_params = [{transform_indices = @transform_0, window_bounds = array<i64: 2, 3, 8, 128>}, {transform_indices = @transform_1, window_bounds = array<i64: 2, 8, 128>}, {transform_indices = @transform_2, window_bounds = array<i64: 40, 128>}]} {
    %c0_i32 = arith.constant 0 : i32
    %0 = arith.cmpi eq, %arg1, %c0_i32 : i32
    %1 = arith.extui %0 : i1 to i32
    %c0_i32_0 = arith.constant 0 : i32
    %2 = arith.cmpi ne, %1, %c0_i32_0 : i32
    scf.if %2 {
      %cst_39 = arith.constant 0.000000e+00 : f32
      %60 = vector.broadcast %cst_39 : f32 to vector<40x128xf32>
      %c0_40 = arith.constant 0 : index
      %c0_41 = arith.constant 0 : index
      %61 = vector.load %arg4[%c0_40, %c0_41] : memref<40x128xf32, #tpu.memory_space<vmem>>, vector<40x128xf32>
      tpu.vector_store %arg4[%c0_40, %c0_41], %60 {strides = array<i32>} : memref<40x128xf32, #tpu.memory_space<vmem>>, vector<40x128xf32>,
    } else {
    }
    %c1_i32 = arith.constant 1 : i32
    %3 = arith.muli %arg0, %c1_i32 : i32
    %4 = arith.addi %3, %arg1 : i32
    %c8_i32 = arith.constant 8 : i32
    %5 = arith.muli %4, %c8_i32 : i32
    %6 = tpu.iota {dimensions = array<i32: 1>} : vector<2x8x128xi32>
    %c0_i32_1 = arith.constant 0 : i32
    %c1_i32_2 = arith.constant 1 : i32
    %7 = arith.muli %c0_i32_1, %c1_i32_2 : i32
    %c0_i32_3 = arith.constant 0 : i32
    %8 = arith.addi %c0_i32_3, %7 : i32
    %c8_i32_4 = arith.constant 8 : i32
    %9 = arith.muli %8, %c8_i32_4 : i32
    %10 = tpu.assume_multiple %9, 8 : i32
    %c0 = arith.constant 0 : index
    %11 = arith.index_cast %10 : i32 to index
    %c0_5 = arith.constant 0 : index
    %12 = vector.load %arg3[%c0, %11, %c0_5] : memref<2x8x128xf32, #tpu.memory_space<vmem>>, vector<2x8x128xf32>
    %c8_i32_6 = arith.constant 8 : i32
    %13 = arith.subi %c8_i32_6, %5 : i32
    %c8_i32_7 = arith.constant 8 : i32
    %14 = arith.muli %8, %c8_i32_7 : i32
    %15 = arith.subi %13, %14 : i32
    %cst = arith.constant 0.000000e+00 : f32
    %16 = vector.broadcast %cst : f32 to vector<2x8x128xf32>
    %17 = arith.cmpf ogt, %12, %16 : vector<2x8x128xf32>
    %18 = vector.broadcast %15 : i32 to vector<2x8x128xi32>
    %19 = arith.cmpi slt, %6, %18 : vector<2x8x128xi32>
    %20 = arith.andi %17, %19 : vector<2x8x128xi1>
    %c0_8 = arith.constant 0 : index
    %c1 = arith.constant 1 : index
    %21 = arith.index_cast %10 : i32 to index
    %c0_9 = arith.constant 0 : index
    %22 = vector.load %arg2[%c0_8, %c1, %21, %c0_9] : memref<2x3x8x128xf32, #tpu.memory_space<vmem>>, vector<2x1x8x128xf32>
    %23 = vector.shape_cast %22 : vector<2x1x8x128xf32> to vector<2x8x128xf32>
    %c0_10 = arith.constant 0 : index
    %c2 = arith.constant 2 : index
    %24 = arith.index_cast %10 : i32 to index
    %c0_11 = arith.constant 0 : index
    %25 = vector.load %arg2[%c0_10, %c2, %24, %c0_11] : memref<2x3x8x128xf32, #tpu.memory_space<vmem>>, vector<2x1x8x128xf32>
    %26 = vector.shape_cast %25 : vector<2x1x8x128xf32> to vector<2x8x128xf32>
    %27 = arith.maximumf %23, %26 : vector<2x8x128xf32>
    %c0_12 = arith.constant 0 : index
    %c0_13 = arith.constant 0 : index
    %28 = arith.index_cast %10 : i32 to index
    %c0_14 = arith.constant 0 : index
    %29 = vector.load %arg2[%c0_12, %c0_13, %28, %c0_14] : memref<2x3x8x128xf32, #tpu.memory_space<vmem>>, vector<2x1x8x128xf32>
    %30 = vector.shape_cast %29 : vector<2x1x8x128xf32> to vector<2x8x128xf32>
    %31 = arith.subf %27, %30 : vector<2x8x128xf32>
    %32 = arith.extui %20 : vector<2x8x128xi1> to vector<2x8x128xi32>
    %33 = arith.sitofp %32 : vector<2x8x128xi32> to vector<2x8x128xf32>
    %cst_15 = arith.constant 0.000000e+00 : f32
    %34 = vector.broadcast %cst_15 : f32 to vector<2x8x128xf32>
    %35 = arith.select %20, %12, %34 : vector<2x8x128xi1>, vector<2x8x128xf32>
    %cst_16 = arith.constant 0.000000e+00 : f32
    %36 = vector.broadcast %cst_16 : f32 to vector<2x8x128xf32>
    %37 = arith.select %20, %31, %36 : vector<2x8x128xi1>, vector<2x8x128xf32>
    %c0_17 = arith.constant 0 : index
    %c0_18 = arith.constant 0 : index
    %38 = vector.load %arg4[%c0_17, %c0_18] : memref<40x128xf32, #tpu.memory_space<vmem>>, vector<8x128xf32>
    %cst_19 = arith.constant dense<0.000000e+00> : vector<8x128xf32>
    %39 = vector.multi_reduction <add>, %33, %cst_19 [0] : vector<2x8x128xf32> to vector<8x128xf32>
    %40 = arith.addf %38, %39 : vector<8x128xf32>
    %c0_20 = arith.constant 0 : index
    %c0_21 = arith.constant 0 : index
    %41 = vector.load %arg4[%c0_20, %c0_21] : memref<40x128xf32, #tpu.memory_space<vmem>>, vector<8x128xf32>
    tpu.vector_store %arg4[%c0_20, %c0_21], %40 {strides = array<i32>} : memref<40x128xf32, #tpu.memory_space<vmem>>, vector<8x128xf32>,
    %c8 = arith.constant 8 : index
    %c0_22 = arith.constant 0 : index
    %42 = vector.load %arg4[%c8, %c0_22] : memref<40x128xf32, #tpu.memory_space<vmem>>, vector<8x128xf32>
    %cst_23 = arith.constant dense<0.000000e+00> : vector<8x128xf32>
    %43 = vector.multi_reduction <add>, %35, %cst_23 [0] : vector<2x8x128xf32> to vector<8x128xf32>
    %44 = arith.addf %42, %43 : vector<8x128xf32>
    %c8_24 = arith.constant 8 : index
    %c0_25 = arith.constant 0 : index
    %45 = vector.load %arg4[%c8_24, %c0_25] : memref<40x128xf32, #tpu.memory_space<vmem>>, vector<8x128xf32>
    tpu.vector_store %arg4[%c8_24, %c0_25], %44 {strides = array<i32>} : memref<40x128xf32, #tpu.memory_space<vmem>>, vector<8x128xf32>,
    %c16 = arith.constant 16 : index
    %c0_26 = arith.constant 0 : index
    %46 = vector.load %arg4[%c16, %c0_26] : memref<40x128xf32, #tpu.memory_space<vmem>>, vector<8x128xf32>
    %cst_27 = arith.constant dense<0.000000e+00> : vector<8x128xf32>
    %47 = vector.multi_reduction <add>, %37, %cst_27 [0] : vector<2x8x128xf32> to vector<8x128xf32>
    %48 = arith.addf %46, %47 : vector<8x128xf32>
    %c16_28 = arith.constant 16 : index
    %c0_29 = arith.constant 0 : index
    %49 = vector.load %arg4[%c16_28, %c0_29] : memref<40x128xf32, #tpu.memory_space<vmem>>, vector<8x128xf32>
    tpu.vector_store %arg4[%c16_28, %c0_29], %48 {strides = array<i32>} : memref<40x128xf32, #tpu.memory_space<vmem>>, vector<8x128xf32>,
    %c24 = arith.constant 24 : index
    %c0_30 = arith.constant 0 : index
    %50 = vector.load %arg4[%c24, %c0_30] : memref<40x128xf32, #tpu.memory_space<vmem>>, vector<8x128xf32>
    %51 = arith.mulf %35, %35 : vector<2x8x128xf32>
    %cst_31 = arith.constant dense<0.000000e+00> : vector<8x128xf32>
    %52 = vector.multi_reduction <add>, %51, %cst_31 [0] : vector<2x8x128xf32> to vector<8x128xf32>
    %53 = arith.addf %50, %52 : vector<8x128xf32>
    %c24_32 = arith.constant 24 : index
    %c0_33 = arith.constant 0 : index
    %54 = vector.load %arg4[%c24_32, %c0_33] : memref<40x128xf32, #tpu.memory_space<vmem>>, vector<8x128xf32>
    tpu.vector_store %arg4[%c24_32, %c0_33], %53 {strides = array<i32>} : memref<40x128xf32, #tpu.memory_space<vmem>>, vector<8x128xf32>,
    %c32 = arith.constant 32 : index
    %c0_34 = arith.constant 0 : index
    %55 = vector.load %arg4[%c32, %c0_34] : memref<40x128xf32, #tpu.memory_space<vmem>>, vector<8x128xf32>
    %56 = arith.mulf %37, %37 : vector<2x8x128xf32>
    %cst_35 = arith.constant dense<0.000000e+00> : vector<8x128xf32>
    %57 = vector.multi_reduction <add>, %56, %cst_35 [0] : vector<2x8x128xf32> to vector<8x128xf32>
    %58 = arith.addf %55, %57 : vector<8x128xf32>
    %c32_36 = arith.constant 32 : index
    %c0_37 = arith.constant 0 : index
    %59 = vector.load %arg4[%c32_36, %c0_37] : memref<40x128xf32, #tpu.memory_space<vmem>>, vector<8x128xf32>
    tpu.vector_store %arg4[%c32_36, %c0_37], %58 {strides = array<i32>} : memref<40x128xf32, #tpu.memory_space<vmem>>, vector<8x128xf32>,
    %c1_i32_38 = arith.constant 1 : i32
    return
  }
  func.func @transform_0(%arg0: i32, %arg1: i32) -> (i32, i32, i32, i32) {
    %c1_i32 = arith.constant 1 : i32
    %0 = arith.muli %arg0, %c1_i32 : i32
    %1 = arith.addi %0, %arg1 : i32
    %c0_i32 = arith.constant 0 : i32
    %2 = arith.minsi %1, %c0_i32 : i32
    %c0_i32_0 = arith.constant 0 : i32
    %c0_i32_1 = arith.constant 0 : i32
    %c0_i32_2 = arith.constant 0 : i32
    %c0_i32_3 = arith.constant 0 : i32
    return %c0_i32_0, %c0_i32_1, %2, %c0_i32_2 : i32, i32, i32, i32
  }
  func.func @transform_1(%arg0: i32, %arg1: i32) -> (i32, i32, i32) {
    %c1_i32 = arith.constant 1 : i32
    %0 = arith.muli %arg0, %c1_i32 : i32
    %1 = arith.addi %0, %arg1 : i32
    %c0_i32 = arith.constant 0 : i32
    %2 = arith.minsi %1, %c0_i32 : i32
    %c0_i32_0 = arith.constant 0 : i32
    %c0_i32_1 = arith.constant 0 : i32
    %c0_i32_2 = arith.constant 0 : i32
    return %c0_i32_0, %2, %c0_i32_1 : i32, i32, i32
  }
  func.func @transform_2(%arg0: i32, %arg1: i32) -> (i32, i32) {
    %c0_i32 = arith.constant 0 : i32
    %c0_i32_0 = arith.constant 0 : i32
    return %arg0, %c0_i32 : i32, i32
  }
}

</mosaic_0001>

<bundles_post_ra>
// kernel: correlation_loss.1
= control target key start
LH: loop header
LB: loop body
LE: loop exit
PB: predicated region body
PF: predicated region fallthrough
CT: control target
= control target key end

     0   :  { %v158_v6 = vmov 0.0   ;;  %s219_s1 = inlined_call_operand.vmem [shape: f32[2,8,128], index: 1, kind: input, shape index: {}]   ;;  %s220_s0 = inlined_call_operand.vmem [shape: f32[2,3,8,128], index: 0, kind: input, shape index: {}]   ;;  %s221_s2 = inlined_call_operand.vmem [shape: f32[40,128], index: 2, kind: output, shape index: {}]  }
   0x1   :  { %v78_v0 = vld [vmem:[%s219_s1] sm:$0xff]  ;;  %v79_v1 = vld [vmem:[%s219_s1 + $0x8] sm:$0xff]  ;;  %v153_v4 = vld [vmem:[%s220_s0 + $0x10] sm:$0xff] }
   0x2   :  { %v151_v2 = vld [vmem:[%s220_s0 + $0x8] sm:$0xff]  ;;  %vm81_vm0 = vcmp.gt.f32.partialorder %v78_v0, 0.0  ;;  %vm82_vm1 = vcmp.gt.f32.partialorder %v79_v1, 0.0  ;;  %v152_v3 = vld [vmem:[%s220_s0 + $0x20] sm:$0xff]  ;;  %v98_v12 = vld [vmem:[%s220_s0 + $0x18] sm:$0xff] }
   0x3   :  { %v154_v5 = vld [vmem:[%s220_s0 + $0x28] sm:$0xff]  ;;  %v155_v7 = vsel %vm81_vm0, 1.0, %v158_v6  ;;  %v156_v8 = vsel %vm82_vm1, 1.0, %v158_v6  ;;  %v105_v9 = vsel %vm81_vm0, %v78_v0, 0.0  ;;  %v106_v10 = vsel %vm82_vm1, %v79_v1, 0.0  ;;  %v97_v11 = vld [vmem:[%s220_s0] sm:$0xff] }
   0x4   :  { %v110_v13 = vadd.f32 %v156_v8, %v155_v7  ;;  %v114_v14 = vadd.f32 %v106_v10, %v105_v9  ;;  %v95_v15 = vmax.f32 %v151_v2, %v153_v4  ;;  %v96_v16 = vmax.f32 %v152_v3, %v154_v5 }
   0x5   :  { %v122_v17 = vmul.f32 %v105_v9, %v105_v9  ;;  %v123_v18 = vmul.f32 %v106_v10, %v106_v10 }
   0x6   :  { %v99_v19 = vsub.f32 %v95_v15, %v97_v11  ;;  %v100_v20 = vsub.f32 %v96_v16, %v98_v12  ;;  %112 = vst [vmem:[%s221_s2] sm:$0xff] %v110_v13  ;;  %116 = vst [vmem:[%s221_s2 + $0x8] sm:$0xff] %v114_v14 }
   0x7   :  { %v124_v21 = vadd.f32 %v123_v18, %v122_v17 }
   0x8   :  { %v107_v22 = vsel %vm81_vm0, %v99_v19, 0.0  ;;  %v108_v23 = vsel %vm82_vm1, %v100_v20, 0.0 }
   0x9   :  { %v118_v24 = vadd.f32 %v108_v23, %v107_v22  ;;  %v128_v25 = vmul.f32 %v107_v22, %v107_v22  ;;  %v129_v26 = vmul.f32 %v108_v23, %v108_v23  ;;  %126 = vst [vmem:[%s221_s2 + $0x18] sm:$0xff] %v124_v21 }
   0xb   :  { %v130_v27 = vadd.f32 %v129_v26, %v128_v25  ;;  %120 = vst [vmem:[%s221_s2 + $0x10] sm:$0xff] %v118_v24 }
   0xd   :  { %132 = vst [vmem:[%s221_s2 + $0x20] sm:$0xff] %v130_v27 }

</bundles_post_ra>
